<compile_context>
chip_gen: v7x
topology: tpu7x:2x2x1
jax: 0.10.0
libtpu: 0.0.40
codegen_flags: <defaults>
</compile_context>

<pallas_src>
import jax
import jax.numpy as jnp
from jax.experimental import pallas as pl
from jax.experimental.pallas import tpu as pltpu

FREQ_MAP = {'h': 4, 't': 5, 's': 6, 'm': 1, 'a': 1, 'w': 2, 'd': 3, 'b': 3}


def _linear_kernel(x_ref, w_ref, o_ref):
    # x_ref: (t, d_inp)  w_ref: (d_inp, d_model)  o_ref: (t, d_model)
    # Tiny K (<= 6) padded inside the MXU — free, since the kernel is
    # HBM-writeback bound. Accumulate in f32, store in the output dtype.
    acc = jnp.dot(
        x_ref[...], w_ref[...],
        preferred_element_type=jnp.float32,
        precision=jax.lax.Precision.HIGHEST,
    )
    o_ref[...] = acc.astype(o_ref.dtype)


def _default_tile() -> int:
    """Row tile large enough to amortize the ~0.35 us per-grid-step overhead."""
    try:
        kind = jax.devices()[0].device_kind.lower()
    except Exception:
        kind = ""
    # v7x: ~3.2 TB/s HBM drains a step much faster -> needs bigger steps.
    if "v7" in kind or "7x" in kind:
        return 8192
    return 4096


def _choose_tile(n_rows: int, requested: int) -> int:
    """Sublane(8)-aligned row tile, never bigger than the (rounded-up) problem."""
    n8 = ((n_rows + 7) // 8) * 8
    t = min(((requested + 7) // 8) * 8, n8)
    return max(t, 8)


def time_feature_embedding(x: jnp.ndarray, weight: jnp.ndarray, *,
                           tile: int | None = None,
                           min_rows_for_pallas: int = 1024) -> jnp.ndarray:
    """Pallas equivalent of TimeFeatureEmbedding.forward: x @ weight.T (no bias).

    x: (..., d_inp); weight: (d_model, d_inp) in PyTorch nn.Linear layout.
    Output dtype follows x.dtype (f32 accumulation inside the kernel).
    """
    d_model, d_inp = weight.shape
    assert x.shape[-1] == d_inp, "last dim of x must equal d_inp"
    lead = x.shape[:-1]
    out_dtype = x.dtype

    n = 1
    for s in lead:
        n *= int(s)
    x_flat = x.reshape(n, d_inp)

    w_t = weight.T                          # (d_inp, d_model)
    if w_t.dtype != x.dtype:
        w_t = w_t.astype(x.dtype)

    # Small-problem fallback: a single fused XLA matmul beats the kernel
    # launch + pipeline prologue at the tiny B*S this module often sees.
    if n < min_rows_for_pallas:
        out = jnp.dot(x_flat, w_t, preferred_element_type=jnp.float32,
                      precision=jax.lax.Precision.HIGHEST).astype(out_dtype)
        return out.reshape(*lead, d_model)

    t = _choose_tile(n, _default_tile() if tile is None else tile)
    grid = (pl.cdiv(n, t),)                 # ragged last block is masked by Pallas

    out = pl.pallas_call(
        _linear_kernel,
        out_shape=jax.ShapeDtypeStruct((n, d_model), out_dtype),
        grid_spec=pltpu.PrefetchScalarGridSpec(
            num_scalar_prefetch=0,
            grid=grid,
            in_specs=[
                pl.BlockSpec((t, d_inp), lambda i: (i, 0)),        # row tile of features
                pl.BlockSpec((d_inp, d_model), lambda i: (0, 0)),  # resident weight
            ],
            out_specs=pl.BlockSpec((t, d_model), lambda i: (i, 0)),
        ),
        compiler_params=pltpu.CompilerParams(
            dimension_semantics=("parallel",),
            # Raise v5e's 16 MiB scoped-VMEM default; matches v6e/v7x defaults.
            vmem_limit_bytes=32 << 20,
        ),
    )(x_flat, w_t)

    return out.reshape(*lead, d_model)


if __name__ == "__main__":
    freq = 't'
    d_inp = FREQ_MAP[freq]                 # 5
    d_model = 128                          # multiple of 128 -> lane-dense stores

    key = jax.random.PRNGKey(0)
    kx, kw, kx2 = jax.random.split(key, 3)

    B, S = 2, 8
    x = jax.random.normal(kx, (B, S, d_inp), dtype=jnp.float32)
    # PyTorch nn.Linear weight layout: (d_model, d_inp)
    weight = jax.random.normal(kw, (d_model, d_inp), dtype=jnp.float32) * (1.0 / (d_inp ** 0.5))

    # 1) Force the Pallas path even at this tiny B*S so the kernel is exercised.
    out = jax.block_until_ready(time_feature_embedding(x, weight, min_rows_for_pallas=0))
    ref = jnp.einsum('bsd,md->bsm', x, weight, precision=jax.lax.Precision.HIGHEST)
    assert out.shape == (B, S, d_model)
    assert out.dtype == x.dtype
    assert jnp.allclose(out, ref, atol=1e-5, rtol=1e-5), "mismatch vs reference linear"

    # 2) Ragged row count (n % tile != 0) exercises the masked boundary block.
    B2, S2 = 3, 70                         # 210 rows, tile=64 -> 4 steps, last masked
    x2 = jax.random.normal(kx2, (B2, S2, d_inp), dtype=jnp.float32)
    out2 = jax.block_until_ready(
        time_feature_embedding(x2, weight, min_rows_for_pallas=0, tile=64))
    ref2 = jnp.einsum('bsd,md->bsm', x2, weight, precision=jax.lax.Precision.HIGHEST)
    assert jnp.allclose(out2, ref2, atol=1e-5, rtol=1e-5), "ragged-grid mismatch"

    # 3) Default dispatch at small B*S takes the fused-XLA fallback.
    out3 = jax.block_until_ready(time_feature_embedding(x, weight))
    assert jnp.allclose(out3, ref, atol=1e-5, rtol=1e-5), "fallback mismatch"

    print("KERNEL_OK")
</pallas_src>

<mosaic_0001>
module attributes {stable_mosaic.version = 11 : i64} {
  func.func @_linear_kernel(%arg0: i32, %arg1: memref<16x5xf32, #tpu.memory_space<vmem>>, %arg2: memref<5x128xf32, #tpu.memory_space<vmem>>, %arg3: memref<16x128xf32, #tpu.memory_space<vmem>>) attributes {dimension_semantics = [#tpu.dimension_semantics<parallel>], iteration_bounds = array<i64: 1>, scalar_prefetch = 0 : i64, scratch_operands = 0 : i64, tpu.core_type = #tpu.core_type<tc>, window_params = [{transform_indices = @transform_0, window_bounds = array<i64: 16, 5>}, {pipeline_mode = #tpu.pipeline_mode<synchronous>, transform_indices = @transform_1, window_bounds = array<i64: 5, 128>}, {transform_indices = @transform_2, window_bounds = array<i64: 16, 128>}]} {
    %c0 = arith.constant 0 : index
    %c0_0 = arith.constant 0 : index
    %0 = vector.load %arg1[%c0, %c0_0] : memref<16x5xf32, #tpu.memory_space<vmem>>, vector<16x5xf32>
    %c0_1 = arith.constant 0 : index
    %c0_2 = arith.constant 0 : index
    %1 = vector.load %arg2[%c0_1, %c0_2] : memref<5x128xf32, #tpu.memory_space<vmem>>, vector<5x128xf32>
    %cst = arith.constant dense<0.000000e+00> : vector<16x128xf32>
    %2 = tpu.matmul %0, %1, %cst {dimension_numbers = #tpu.dot_dimension_numbers<[1], [0], [0], [1], [0, 0, 1, 1], [], []>, precision = #tpu.contract_precision<fp32>} : vector<16x5xf32>, vector<5x128xf32>, vector<16x128xf32> -> vector<16x128xf32>
    %c0_3 = arith.constant 0 : index
    %c0_4 = arith.constant 0 : index
    %3 = vector.load %arg3[%c0_3, %c0_4] : memref<16x128xf32, #tpu.memory_space<vmem>>, vector<16x128xf32>
    tpu.vector_store %arg3[%c0_3, %c0_4], %2 {strides = array<i32>} : memref<16x128xf32, #tpu.memory_space<vmem>>, vector<16x128xf32>,
    return
  }
  func.func @transform_0(%arg0: i32) -> (i32, i32) {
    %c0_i32 = arith.constant 0 : i32
    %c0_i32_0 = arith.constant 0 : i32
    return %arg0, %c0_i32 : i32, i32
  }
  func.func @transform_1(%arg0: i32) -> (i32, i32) {
    %c0_i32 = arith.constant 0 : i32
    %c0_i32_0 = arith.constant 0 : i32
    %c0_i32_1 = arith.constant 0 : i32
    return %c0_i32, %c0_i32_0 : i32, i32
  }
  func.func @transform_2(%arg0: i32) -> (i32, i32) {
    %c0_i32 = arith.constant 0 : i32
    %c0_i32_0 = arith.constant 0 : i32
    return %arg0, %c0_i32 : i32, i32
  }
}

</mosaic_0001>

<bundles_post_ra>
// kernel: tpu_custom_call.1
= control target key start
LH: loop header
LB: loop body
LE: loop exit
PB: predicated region body
PF: predicated region fallthrough
CT: control target
= control target key end

     0   :  { %vm22_vm0 = vcmask 1044480   ;;  %vm15_vm1 = vcmask 39936   ;;  %s657_s0 = inlined_call_operand.vmem [shape: f32[16,5], index: 0, kind: input, shape index: {}]   ;;  %s658_s1 = inlined_call_operand.vmem [shape: f32[5,128], index: 1, kind: input, shape index: {}]   ;;  %s659_s2 = inlined_call_operand.hbm [shape: f32[16,128], index: 2, kind: output, shape index: {}]  }
   0x1   :  { %v14_v0 = vld [vmem:[%s658_s1] sm:$0x1f]  ;;  %v13_v2 = vld [vmem:[%s657_s0 + $0x8] sm:$0xff] }
   0x2   :  { %v12_v1 = vld [vmem:[%s657_s0] sm:$0xff]  ;;  %v24_v3 = vsel %vm22_vm0, %v14_v0, 0  ;;  %v20_v5 = vsel %vm15_vm1, %v13_v2, 0 }
   0x3   :  { %v17_v4 = vsel %vm15_vm1, %v12_v1, 0 }
   0x4   :  { %7 = vsyncpa [#allocation3], 0  ;;  %v27_v6 = vand.u32 4294901760, %v24_v3  ;;  %v92_v7 = vand.u32 4294901760, %v17_v4  ;;  %v102_v8 = vand.u32 4294901760, %v20_v5  ;;  %s618_s0 = smov [#allocation2]  }
   0x5   :  { %s522_s1 = sshll.u32 %s618_s0, 4  ;;  %s523_s1 = int_to_ptr.vmem [resolvable:$true] %s522_s1 }
   0x6   :  { %566 = vmatprep.subr.mxu0 %v27_v6  ;;  %v93_v9 = vsub.f32 %v17_v4, %v92_v7  ;;  %v103_v10 = vsub.f32 %v20_v5, %v102_v8  ;;  %551 = vmatprep.subr.mxu1 %v27_v6  ;;  %v114_v11 = vsub.f32 %v24_v3, %v27_v6  ;;  %s594_s15 = scalar_lea.vmem %s523_s1, 256  ;;  %p599_p1 = scmp.lt.s32.totalorder %s523_s1, %s523_s1 }
   0x7   :  { %567 = vmatpush3.msra.mxu0 %v27_v6  ;;  %552 = vmatpush3.msra.mxu1 %v27_v6  ;;  %p595_p0 = scmp.ne.s32.totalorder %s523_s1, %s594_s15  ;;  %p600_p2 = scmp.lt.s32.totalorder %s594_s15, %s594_s15 }
   0x8   :  { %v94_v12 = vand.u32 4294901760, %v93_v9  ;;  %v104_v13 = vand.u32 4294901760, %v103_v10  ;;  %v115_v14 = vand.u32 4294901760, %v114_v11 }
   0x9   :  { %p601_p3 = por %p600_p2, %p599_p1 }
   0xa   :  { %568 = vmatprep.mubr.f32.mxu0 %v94_v12  ;;  %v95_v15 = vsub.f32 %v93_v9, %v94_v12  ;;  %v116_v16 = vsub.f32 %v114_v11, %v115_v14  ;;  %571 = vmatprep.subr.mxu0 %v115_v14  ;;  %v105_v17 = vsub.f32 %v103_v10, %v104_v13 }
   0xb   :  { %569 = vmatmul.mubr.f32.vlgmr.msra.gmra.mrb[0].mxu0 %v104_v13  ;;  %p602_p4 = pnand %p601_p3, %p595_p0 }
   0xc   :  { %v96_v18 = vand.u32 4294901760, %v95_v15  ;;  %v117_v19 = vand.u32 4294901760, %v116_v16  ;;  %v106_v20 = vand.u32 4294901760, %v105_v17  ;;  %572 = vmatpush3.msra.mxu0 %v115_v14  ;;  %573 = vmatprep.mubr.f32.mxu0 %v92_v7 }
   0xd   :  { %576 = vmatprep.subr.mxu0 %v27_v6 }
   0xe   :  { %553 = vmatprep.mubr.f32.mxu1 %v96_v18  ;;  %556 = vmatprep.subr.mxu1 %v117_v19 }
   0xf   :  { %554 = vmatmul.mubr.f32.vlgmr.msra.gmra.mrb[0].mxu1 %v106_v20 }
  0x10   :  { %557 = vmatpush3.msra.mxu1 %v117_v19  ;;  %558 = vmatprep.mubr.f32.mxu1 %v92_v7 }
  0x11   :  { %561 = vmatprep.subr.mxu1 %v114_v11 }
  0x13   :  { %574 = vmatmul.mubr.f32.vlgmr.msra.gmra.mrb[0].mxu0 %v102_v8 }
  0x14   :  { %577 = vmatpush3.msra.mxu0 %v27_v6  ;;  %578 = vmatprep.mubr.f32.mxu0 %v92_v7 }
  0x17   :  { %559 = vmatmul.mubr.f32.vlgmr.msra.gmra.mrb[0].mxu1 %v102_v8 }
  0x18   :  { %562 = vmatpush3.msra.mxu1 %v114_v11  ;;  %563 = vmatprep.mubr.f32.mxu1 %v93_v9 }
  0x1b   :  { %579 = vmatmul.mubr.f32.vlgmr.msra.gmra.mrb[0].mxu0 %v102_v8 }
  0x1f   :  { %564 = vmatmul.mubr.f32.vlgmr.msra.gmra.mrb[0].mxu1 %v103_v10 }
  0xee   :  { %v580_v21 = vpop.f32.mrb[0].mxu0 }
  0xef   :  { %v505_v22 = vpop.f32.mrb[1].mxu0 }
  0xf2   :  { %v565_v23 = vpop.f32.mrb[0].mxu1 }
  0xf3   :  { %v581_v24 = vadd.f32 %v580_v21, %v565_v23  ;;  %v264_v25 = vpop.f32.mrb[1].mxu1 }
  0xf4   :  { %v582_v26 = vadd.f32 %v505_v22, %v264_v25 }
  0xf5   :  { %516 = vst [vmem:[#allocation2 + $0x8] sm:$0xff] %v581_v24 }
  0xf6   :  { %515 = vst [vmem:[#allocation2] sm:$0xff] %v582_v26 }
  0xf7   :  { %605 = shalt.err (!%p602_p4)
}
  0xf8   :  { %s606_s18 = scalar_lea.hbm %s659_s2, 256 }
  0xf9   :  { %p607_p5 = scmp.ne.s32.totalorder %s659_s2, %s606_s18  ;;  %p610_p6 = scmp.lt.u32.totalorder %s606_s18, %s659_s2 }
  0xfb   :  { %p612_p7 = pnand %p610_p6, %p607_p5 }
  0xfd   :  { %615 = shalt.err (!%p612_p7)
}
  0xfe   :  { %s619_s23 = smov 128   ;;  %s620_s24 = smov 8  }
  0xff   :  { %528 = dma.vmem_to_hbm [thread:$0]  %s523_s1, 256, %s659_s2, [#allocation3], %s619_s23, %s619_s23, %s620_s24  }
 0x100   :  { %616 = dma.done.wait [#allocation3], 256  }
 0x101   :  { %617 = vsyncadd [#allocation3], 4294967040 }
 0x102   :  { %532 = vsyncpa [#allocation3], 1 }

</bundles_post_ra>
